<compile_context>
chip_gen: v6e
topology: v6e:2x2x1
jax: 0.10.0
libtpu: 0.0.40
codegen_flags: <defaults>
</compile_context>

<pallas_src>
import functools

import jax
import jax.numpy as jnp
from jax.experimental import pallas as pl
from jax.experimental.pallas import tpu as pltpu


def _round_up(v, m):
    return ((v + m - 1) // m) * m


def _vmem_capacity_bytes():
    """Physical VMEM per TensorCore (128 MiB on v5e/v6e, 64 MiB on v7x)."""
    try:
        info = pltpu.get_tpu_info()
        cap = getattr(info, "vmem_capacity_bytes", None)
        if cap:
            return int(cap)
    except Exception:
        pass
    return 64 << 20  # conservative default (v7x per-core VMEM)


def projection_kernel(x_ref, w_ref, b_ref, o_ref, acc_ref, *, inv_seq_len):
    # x_ref: (tb, ts, D) native dtype   w_ref: (D, C)   b_ref: (1, C)
    # o_ref: (tb, C)                    acc_ref: (tb, D) f32 scratch
    k = pl.program_id(1)

    @pl.when(k == 0)
    def _init():
        acc_ref[...] = jnp.zeros_like(acc_ref)

    # Raw SUM over this sequence tile, accumulated in f32 (native-dtype load,
    # no full-block upcast of x).
    acc_ref[...] += jnp.sum(x_ref[...], axis=1, dtype=jnp.float32)

    @pl.when(k == pl.num_programs(1) - 1)
    def _finalize():
        # Matmul on the raw sum; apply the 1/S mean-scale once on the small
        # (tb, C) result.  No explicit astype of W (avoids a D x C f32 temp).
        out = jnp.dot(acc_ref[...], w_ref[...],
                      preferred_element_type=jnp.float32)        # (tb, C) f32
        out = out * inv_seq_len + b_ref[...]                     # broadcast (1, C)
        o_ref[...] = out.astype(o_ref.dtype)


def projection_layer(x, weight_t, bias2d):
    """x: (B, S, D), weight_t: (D, C), bias2d: (1, C) -> (B, C)."""
    B, S, D = x.shape
    C = weight_t.shape[1]

    x_itemsize = jnp.dtype(x.dtype).itemsize
    w_itemsize = jnp.dtype(weight_t.dtype).itemsize
    b_itemsize = jnp.dtype(bias2d.dtype).itemsize
    out_dtype = jnp.result_type(x.dtype, weight_t.dtype)
    out_itemsize = jnp.dtype(out_dtype).itemsize

    # Sublane alignment per dtype (second-to-last dim of a VMEM tile).
    x_sub = {4: 8, 2: 16, 1: 32}.get(x_itemsize, 8)
    out_sub = {4: 8, 2: 16, 1: 32}.get(out_itemsize, 8)

    # ---- Chip-aware VMEM budget -------------------------------------------
    vmem_cap = _vmem_capacity_bytes()
    if vmem_cap >= (96 << 20):            # v5e / v6e: 128 MiB physical VMEM
        x_tile_target = 16 << 20          # per x buffer (double-buffered)
        vmem_ceiling = min((vmem_cap * 7) // 8, 112 << 20)
    else:                                 # v7x: 64 MiB per TensorCore
        x_tile_target = 8 << 20
        vmem_ceiling = min((vmem_cap * 3) // 4, 48 << 20)

    # ---- Tile sizes ---------------------------------------------------------
    # Small batch tile: acc / epilogue only need tb rows; spending the budget
    # on ts gives long contiguous DMAs, fewer grid steps, and more B grid
    # iterations for megacore sharding on v7x.
    tb = max(8, out_sub)

    # Lane-padded footprints (what tiles actually occupy in VMEM).
    c_pad = _round_up(C, 128)
    d_pad = _round_up(D, 128)
    w_bytes = _round_up(D, 8) * c_pad * w_itemsize
    b_bytes = 8 * c_pad * b_itemsize
    out_bytes = tb * c_pad * out_itemsize
    acc_bytes = tb * d_pad * 4
    # W / bias / out are double-buffered by the default pipeline.
    # TODO(synk): single-buffer the grid-constant W/bias via
    #             pipeline_mode=pl.Buffered(1) once confirmed supported by the
    #             pallas_call pipeline on the deployed jax version.
    resident_bytes = 2 * w_bytes + 2 * b_bytes + 2 * out_bytes + acc_bytes

    headroom = 4 << 20
    avail_for_x = max(vmem_ceiling - resident_bytes - headroom, 2 << 20)
    per_x_buffer = min(x_tile_target, avail_for_x // 2)

    row_bytes = tb * d_pad * x_itemsize           # one sequence step of a tile
    ts = max(x_sub, (per_x_buffer // max(1, row_bytes)) // x_sub * x_sub)
    ts = min(ts, _round_up(S, x_sub))

    # ---- Host-side zero padding to tile multiples (ragged B / S) ------------
    # Zero rows along S leave the SUM unchanged (we divide by the true S), so
    # the mean stays exact; padded B rows are sliced off the output.
    Bp = _round_up(B, tb)
    Sp = _round_up(S, ts)
    if (Bp, Sp) != (B, S):
        x = jnp.pad(x, ((0, Bp - B), (0, Sp - S), (0, 0)))

    grid = (Bp // tb, Sp // ts)

    # ---- VMEM limit (no double counting) ------------------------------------
    x_tile_bytes = tb * ts * d_pad * x_itemsize
    vmem_need = 2 * x_tile_bytes + resident_bytes
    vmem_limit = int(min(max(vmem_need + headroom, 32 << 20), vmem_ceiling))

    cost = pl.CostEstimate(
        flops=2 * Bp * D * C + Bp * Sp * D,
        transcendentals=0,
        bytes_accessed=(Bp * Sp * D * x_itemsize
                        + D * C * w_itemsize
                        + C * b_itemsize
                        + Bp * C * out_itemsize),
    )

    kernel = functools.partial(projection_kernel, inv_seq_len=1.0 / float(S))

    out = pl.pallas_call(
        kernel,
        out_shape=jax.ShapeDtypeStruct((Bp, C), out_dtype),
        grid_spec=pltpu.PrefetchScalarGridSpec(
            num_scalar_prefetch=0,
            grid=grid,
            in_specs=[
                # x: tiled over (B, S); D kept whole (lane axis).
                pl.BlockSpec((tb, ts, D), lambda i, k: (i, k, 0)),
                # weight / bias: constant block index -> DMA'd once, resident.
                # TODO(synk): for very large D*C that cannot sit in VMEM, stream
                #             W in C-chunks during the finalize step
                #             (memory_space=pl.ANY + make_async_copy) instead of
                #             holding the whole (D, C) block resident.
                pl.BlockSpec((D, C), lambda i, k: (0, 0)),
                pl.BlockSpec((1, C), lambda i, k: (0, 0)),
            ],
            out_specs=pl.BlockSpec((tb, C), lambda i, k: (i, 0)),
            scratch_shapes=[pltpu.VMEM((tb, D), jnp.float32)],
        ),
        compiler_params=pltpu.CompilerParams(
            dimension_semantics=("parallel", "arbitrary"),
            vmem_limit_bytes=vmem_limit,
        ),
        cost_estimate=cost,
    )(x, weight_t, bias2d)

    return out[:B] if Bp != B else out


if __name__ == "__main__":
    # Shapes consistent with the module's forward:
    #   x: (batch, seq, d_model) = (2, 8, 32), num_classes = 10
    B, S, D, C = 2, 8, 32, 10

    key = jax.random.PRNGKey(0)
    kx, kw, kb = jax.random.split(key, 3)

    x = jax.random.normal(kx, (B, S, D), dtype=jnp.float32)

    # Deterministic nn.Linear-style init: U(-1/sqrt(d_model), 1/sqrt(d_model))
    bound = 1.0 / jnp.sqrt(jnp.float32(D))
    weight = jax.random.uniform(kw, (C, D), minval=-bound, maxval=bound,
                                dtype=jnp.float32)   # torch layout (out, in)
    bias = jax.random.uniform(kb, (C,), minval=-bound, maxval=bound,
                              dtype=jnp.float32)

    weight_t = weight.T                 # (D, C) for the kernel
    bias_2d = bias.reshape(1, C)        # (1, C) TPU-friendly scalar row

    out = projection_layer(x, weight_t, bias_2d)
    out = jax.block_until_ready(out)

    ref = jnp.mean(x, axis=-2) @ weight.T + bias
    assert out.shape == (B, C)
    assert jnp.allclose(out, ref, atol=1e-5, rtol=1e-5), "mismatch vs reference"

    # Second check: ragged (non-divisible) B and S exercise the padded-tile path.
    B2, S2, D2 = 3, 70, 256
    kx2, kw2, kb2 = jax.random.split(jax.random.PRNGKey(0), 3)
    x2 = jax.random.normal(kx2, (B2, S2, D2), dtype=jnp.float32)
    bound2 = 1.0 / jnp.sqrt(jnp.float32(D2))
    w2 = jax.random.uniform(kw2, (C, D2), minval=-bound2, maxval=bound2,
                            dtype=jnp.float32)
    b2 = jax.random.uniform(kb2, (C,), minval=-bound2, maxval=bound2,
                            dtype=jnp.float32)
    out2 = jax.block_until_ready(projection_layer(x2, w2.T, b2.reshape(1, C)))
    ref2 = jnp.mean(x2, axis=-2) @ w2.T + b2
    assert out2.shape == (B2, C)
    assert jnp.allclose(out2, ref2, atol=1e-4, rtol=1e-4), "ragged mismatch"

    print("KERNEL_OK")
</pallas_src>

<mosaic_0001>
module attributes {stable_mosaic.version = 11 : i64} {
  func.func @projection_kernel(%arg0: i32, %arg1: i32, %arg2: memref<8x8x32xf32, #tpu.memory_space<vmem>>, %arg3: memref<32x10xf32, #tpu.memory_space<vmem>>, %arg4: memref<1x10xf32, #tpu.memory_space<vmem>>, %arg5: memref<8x10xf32, #tpu.memory_space<vmem>>, %arg6: memref<8x32xf32, #tpu.memory_space<vmem>>) attributes {dimension_semantics = [#tpu.dimension_semantics<parallel>, #tpu.dimension_semantics<arbitrary>], iteration_bounds = array<i64: 1, 1>, scalar_prefetch = 0 : i64, scratch_operands = 1 : i64, tpu.core_type = #tpu.core_type<tc>, window_params = [{transform_indices = @transform_0, window_bounds = array<i64: 8, 8, 32>}, {pipeline_mode = #tpu.pipeline_mode<synchronous>, transform_indices = @transform_1, window_bounds = array<i64: 32, 10>}, {pipeline_mode = #tpu.pipeline_mode<synchronous>, transform_indices = @transform_2, window_bounds = array<i64: 1, 10>}, {transform_indices = @transform_3, window_bounds = array<i64: 8, 10>}]} {
    %c0_i32 = arith.constant 0 : i32
    %0 = arith.cmpi eq, %arg1, %c0_i32 : i32
    %1 = arith.extui %0 : i1 to i32
    %c0_i32_0 = arith.constant 0 : i32
    %2 = arith.cmpi ne, %1, %c0_i32_0 : i32
    scf.if %2 {
      %cst_9 = arith.constant 0.000000e+00 : f32
      %11 = vector.broadcast %cst_9 : f32 to vector<8x32xf32>
      %c0_10 = arith.constant 0 : index
      %c0_11 = arith.constant 0 : index
      %12 = vector.load %arg6[%c0_10, %c0_11] : memref<8x32xf32, #tpu.memory_space<vmem>>, vector<8x32xf32>
      tpu.vector_store %arg6[%c0_10, %c0_11], %11 {strides = array<i32>} : memref<8x32xf32, #tpu.memory_space<vmem>>, vector<8x32xf32>,
    } else {
    }
    %c0 = arith.constant 0 : index
    %c0_1 = arith.constant 0 : index
    %3 = vector.load %arg6[%c0, %c0_1] : memref<8x32xf32, #tpu.memory_space<vmem>>, vector<8x32xf32>
    %c0_2 = arith.constant 0 : index
    %c0_3 = arith.constant 0 : index
    %c0_4 = arith.constant 0 : index
    %4 = vector.load %arg2[%c0_2, %c0_3, %c0_4] : memref<8x8x32xf32, #tpu.memory_space<vmem>>, vector<8x8x32xf32>
    %cst = arith.constant dense<0.000000e+00> : vector<8x32xf32>
    %5 = vector.multi_reduction <add>, %4, %cst [1] : vector<8x8x32xf32> to vector<8x32xf32>
    %6 = arith.addf %3, %5 : vector<8x32xf32>
    %c0_5 = arith.constant 0 : index
    %c0_6 = arith.constant 0 : index
    %7 = vector.load %arg6[%c0_5, %c0_6] : memref<8x32xf32, #tpu.memory_space<vmem>>, vector<8x32xf32>
    tpu.vector_store %arg6[%c0_5, %c0_6], %6 {strides = array<i32>} : memref<8x32xf32, #tpu.memory_space<vmem>>, vector<8x32xf32>,
    %c0_i32_7 = arith.constant 0 : i32
    %8 = arith.cmpi eq, %arg1, %c0_i32_7 : i32
    %9 = arith.extui %8 : i1 to i32
    %c0_i32_8 = arith.constant 0 : i32
    %10 = arith.cmpi ne, %9, %c0_i32_8 : i32
    scf.if %10 {
      %c0_9 = arith.constant 0 : index
      %c0_10 = arith.constant 0 : index
      %11 = vector.load %arg6[%c0_9, %c0_10] : memref<8x32xf32, #tpu.memory_space<vmem>>, vector<8x32xf32>
      %c0_11 = arith.constant 0 : index
      %c0_12 = arith.constant 0 : index
      %12 = vector.load %arg3[%c0_11, %c0_12] : memref<32x10xf32, #tpu.memory_space<vmem>>, vector<32x10xf32>
      %cst_13 = arith.constant dense<0.000000e+00> : vector<8x10xf32>
      %13 = tpu.matmul %11, %12, %cst_13 {dimension_numbers = #tpu.dot_dimension_numbers<[1], [0], [0], [1], [0, 0, 1, 1], [], []>} : vector<8x32xf32>, vector<32x10xf32>, vector<8x10xf32> -> vector<8x10xf32>
      %cst_14 = arith.constant 1.250000e-01 : f32
      %14 = vector.broadcast %cst_14 : f32 to vector<8x10xf32>
      %15 = arith.mulf %13, %14 : vector<8x10xf32>
      %c0_15 = arith.constant 0 : index
      %c0_16 = arith.constant 0 : index
      %16 = vector.load %arg4[%c0_15, %c0_16] : memref<1x10xf32, #tpu.memory_space<vmem>>, vector<1x10xf32>
      %17 = vector.broadcast %16 : vector<1x10xf32> to vector<8x10xf32>
      %18 = arith.addf %15, %17 : vector<8x10xf32>
      %c0_17 = arith.constant 0 : index
      %c0_18 = arith.constant 0 : index
      %19 = vector.load %arg5[%c0_17, %c0_18] : memref<8x10xf32, #tpu.memory_space<vmem>>, vector<8x10xf32>
      tpu.vector_store %arg5[%c0_17, %c0_18], %18 {strides = array<i32>} : memref<8x10xf32, #tpu.memory_space<vmem>>, vector<8x10xf32>,
    } else {
    }
    return
  }
  func.func @transform_0(%arg0: i32, %arg1: i32) -> (i32, i32, i32) {
    %c0_i32 = arith.constant 0 : i32
    %c0_i32_0 = arith.constant 0 : i32
    return %arg0, %arg1, %c0_i32 : i32, i32, i32
  }
  func.func @transform_1(%arg0: i32, %arg1: i32) -> (i32, i32) {
    %c0_i32 = arith.constant 0 : i32
    %c0_i32_0 = arith.constant 0 : i32
    %c0_i32_1 = arith.constant 0 : i32
    return %c0_i32, %c0_i32_0 : i32, i32
  }
  func.func @transform_2(%arg0: i32, %arg1: i32) -> (i32, i32) {
    %c0_i32 = arith.constant 0 : i32
    %c0_i32_0 = arith.constant 0 : i32
    %c0_i32_1 = arith.constant 0 : i32
    return %c0_i32, %c0_i32_0 : i32, i32
  }
  func.func @transform_3(%arg0: i32, %arg1: i32) -> (i32, i32) {
    %c0_i32 = arith.constant 0 : i32
    %c0_i32_0 = arith.constant 0 : i32
    return %arg0, %c0_i32 : i32, i32
  }
}

</mosaic_0001>

<bundles_post_ra>
// kernel: tpu_custom_call.1
= control target key start
LH: loop header
LB: loop body
LE: loop exit
PB: predicated region body
PF: predicated region fallthrough
CT: control target
= control target key end

     0   :  { %8 = vsyncpa [#allocation4], 0  ;;  %s361_s0 = inlined_call_operand.hbm [shape: f32[8,8,32], index: 0, kind: input, shape index: {}]   ;;  %s362_s1 = inlined_call_operand.vmem [shape: f32[32,10], index: 1, kind: input, shape index: {}]   ;;  %s363_s2 = inlined_call_operand.vmem [shape: f32[1,10], index: 2, kind: input, shape index: {}]   ;;  %s364_s3 = inlined_call_operand.hbm [shape: f32[8,10], index: 3, kind: output, shape index: {}]  }
   0x1   :  { %9 = vsyncpa [#allocation5], 0  ;;  %s301_s12 = smov [#allocation3]  }
   0x2   :  { %s15_s13 = sshll.u32 %s301_s12, 4  ;;  %s16_s13 = int_to_ptr.vmem [resolvable:$true] %s15_s13 }
   0x3   :  { %s265_s14 = scalar_lea.vmem %s16_s13, 1024  ;;  %p270_p1 = scmp.lt.s32.totalorder %s16_s13, %s16_s13 }
   0x4   :  { %p266_p0 = scmp.ne.s32.totalorder %s16_s13, %s265_s14  ;;  %p271_p2 = scmp.lt.s32.totalorder %s265_s14, %s265_s14 }
   0x6   :  { %p272_p3 = por %p271_p2, %p270_p1 }
   0x8   :  { %p273_p4 = pnand %p272_p3, %p266_p0 }
   0xa   :  { %276 = shalt.err (!%p273_p4)
}
   0xb   :  { %s302_s15 = smov 128   ;;  %s303_s16 = smov 8  }
   0xc   :  { %21 = dma.hbm_to_vmem [thread:$0]  %s361_s0, 1024, %s16_s13, [#allocation4], %s302_s15, %s302_s15, %s303_s16  }
   0xd   :  { %297 = dma.done.wait [#allocation4], 1024  }
   0xe   :  { %298 = vsyncadd [#allocation4], 4294966272  ;;  %vm33_vm0 = vcmask 261120   ;;  %v304_v0 = vmov 0.0   ;;  %vm305_vm1 = vmmov 0   ;;  %v36_v1 = vld [vmem:[#allocation3] sm:$0xff] }
   0xf   :  { %34 = vst.msk [vmem:[#allocation2] sm:$0xff] %vm33_vm0, %v304_v0  ;;  %240 = vmatprep.subr.mxu0 %v304_v0  ;;  %248 = vmatprep.mubr.msk.f32.mxu0 %vm305_vm1, %v304_v0  ;;  %v37_v2 = vld [vmem:[#allocation3 + $0x8] sm:$0xff]  ;;  %v38_v3 = vld [vmem:[#allocation3 + $0x10] sm:$0xff]  ;;  %v39_v4 = vld [vmem:[#allocation3 + $0x18] sm:$0xff]  ;;  %v45_v6 = vsel %vm33_vm0, %v36_v1, 0.0  ;;  %vm109_vm2 = vcmask 1041409  }
  0x10   :  { %v40_v5 = vld [vmem:[#allocation3 + $0x20] sm:$0xff]  ;;  %v52_v7 = vsel %vm33_vm0, %v37_v2, 0.0  ;;  %v59_v8 = vsel %vm33_vm0, %v38_v3, 0.0  ;;  %v41_v9 = vld [vmem:[#allocation3 + $0x28] sm:$0xff]  ;;  %v42_v10 = vld [vmem:[#allocation3 + $0x30] sm:$0xff]  ;;  %v46_v12 = vrot.slane %v45_v6, 4 }
  0x11   :  { %v43_v11 = vld [vmem:[#allocation3 + $0x38] sm:$0xff]  ;;  %v53_v13 = vrot.slane %v52_v7, 4  ;;  %v60_v14 = vrot.slane %v59_v8, 4  ;;  %v66_v15 = vsel %vm33_vm0, %v39_v4, 0.0  ;;  %v73_v16 = vsel %vm33_vm0, %v40_v5, 0.0  ;;  %v133_v19 = vld [vmem:[%s362_s1 + $0x18] sm:$0xff] }
  0x12   :  { %v80_v17 = vsel %vm33_vm0, %v41_v9, 0.0  ;;  %v87_v18 = vsel %vm33_vm0, %v42_v10, 0.0  ;;  %v132_v20 = vld [vmem:[%s362_s1 + $0x10] sm:$0xff]  ;;  %v47_v21 = vadd.f32 %v46_v12, %v45_v6  ;;  %v67_v24 = vrot.slane %v66_v15, 4  ;;  %241 = vmatpush3.msra.mxu0 %v133_v19  ;;  %v131_v29 = vld [vmem:[%s362_s1 + $0x8] sm:$0xff]  ;;  %v130_v38 = vld [vmem:[%s362_s1] sm:$0xff] }
  0x13   :  { %v54_v22 = vadd.f32 %v53_v13, %v52_v7  ;;  %v61_v23 = vadd.f32 %v60_v14, %v59_v8  ;;  %v74_v25 = vrot.slane %v73_v16, 4  ;;  %v81_v26 = vrot.slane %v80_v17, 4  ;;  %242 = vmatprep.subr.mxu0 %v304_v0  ;;  %s306_s27 = smov [#allocation6]  }
  0x14   :  { %v88_v27 = vrot.slane %v87_v18, 4  ;;  %v94_v28 = vsel %vm33_vm0, %v43_v11, 0.0  ;;  %vm111_vm3 = vcmask 1042434   ;;  %v48_v30 = vrot.slane %v47_v21, 2  ;;  %243 = vmatpush3.msra.mxu0 %v132_v20  ;;  %s224_s28 = sshll.u32 %s306_s27, 4  ;;  %s225_s28 = int_to_ptr.vmem [resolvable:$true] %s224_s28 }
  0x15   :  { %v55_v31 = vrot.slane %v54_v22, 2  ;;  %v62_v32 = vrot.slane %v61_v23, 2  ;;  %v68_v33 = vadd.f32 %v67_v24, %v66_v15  ;;  %v75_v34 = vadd.f32 %v74_v25, %v73_v16  ;;  %244 = vmatprep.subr.mxu0 %v304_v0  ;;  %v234_v16 = vld [vmem:[%s363_s2] ss:$0 sm:$0xff]  ;;  %s277_s29 = scalar_lea.vmem %s225_s28, 128  ;;  %p282_p6 = scmp.lt.s32.totalorder %s225_s28, %s225_s28 }
  0x16   :  { %v82_v35 = vadd.f32 %v81_v26, %v80_v17  ;;  %v89_v36 = vadd.f32 %v88_v27, %v87_v18  ;;  %v95_v37 = vrot.slane %v94_v28, 4  ;;  %v49_v39 = vadd.f32 %v48_v30, %v47_v21  ;;  %245 = vmatpush3.msra.mxu0 %v131_v29  ;;  %v35_v9 = vld [vmem:[#allocation2] sm:$0xff]  ;;  %p278_p5 = scmp.ne.s32.totalorder %s225_s28, %s277_s29  ;;  %p283_p7 = scmp.lt.s32.totalorder %s277_s29, %s277_s29 }
  0x17   :  { %v56_v40 = vadd.f32 %v55_v31, %v54_v22  ;;  %v63_v41 = vadd.f32 %v62_v32, %v61_v23  ;;  %v69_v42 = vrot.slane %v68_v33, 2  ;;  %v76_v43 = vrot.slane %v75_v34, 2  ;;  %246 = vmatprep.subr.mxu0 %v304_v0 }
  0x18   :  { %v83_v44 = vrot.slane %v82_v35, 2  ;;  %v90_v45 = vrot.slane %v89_v36, 2  ;;  %v96_v46 = vadd.f32 %v95_v37, %v94_v28  ;;  %v50_v47 = vrot.slane %v49_v39, 1  ;;  %247 = vmatpush3.msra.mxu0 %v130_v38  ;;  %p284_p8 = por %p283_p7, %p282_p6 }
  0x19   :  { %v57_v48 = vrot.slane %v56_v40, 1  ;;  %v64_v49 = vrot.slane %v63_v41, 1  ;;  %v70_v50 = vadd.f32 %v69_v42, %v68_v33  ;;  %v77_v51 = vadd.f32 %v76_v43, %v75_v34 }
  0x1a   :  { %v84_v52 = vadd.f32 %v83_v44, %v82_v35  ;;  %v91_v53 = vadd.f32 %v90_v45, %v89_v36  ;;  %v97_v54 = vrot.slane %v96_v46, 2  ;;  %v51_v55 = vadd.f32 %v50_v47, %v49_v39  ;;  %p285_p9 = pnand %p284_p8, %p278_p5 }
  0x1b   :  { %v58_v56 = vadd.f32 %v57_v48, %v56_v40  ;;  %v65_v57 = vadd.f32 %v64_v49, %v63_v41  ;;  %v71_v58 = vrot.slane %v70_v50, 1  ;;  %v78_v59 = vrot.slane %v77_v51, 1 }
  0x1c   :  { %v85_v60 = vrot.slane %v84_v52, 1  ;;  %v92_v61 = vrot.slane %v91_v53, 1  ;;  %v98_v62 = vadd.f32 %v97_v54, %v96_v46  ;;  %vm113_vm4 = vcmask 1043459  }
  0x1d   :  { %v72_v63 = vadd.f32 %v71_v58, %v70_v50  ;;  %v110_v0 = vsel %vm109_vm2, %v58_v56, %v51_v55  ;;  %v79_v1 = vadd.f32 %v78_v59, %v77_v51  ;;  %vm115_vm5 = vcmask 1044484  }
  0x1e   :  { %v86_v2 = vadd.f32 %v85_v60, %v84_v52  ;;  %v99_v3 = vrot.slane %v98_v62, 1  ;;  %v93_v4 = vadd.f32 %v92_v61, %v91_v53  ;;  %v112_v5 = vsel %vm111_vm3, %v65_v57, %v110_v0 }
  0x1f   :  { %vm117_vm6 = vcmask 1045509   ;;  %v114_v7 = vsel %vm113_vm4, %v72_v63, %v112_v5  ;;  %vm119_vm7 = vcmask 1046534   ;;  %vm121_vm8 = vcmask 1047559  }
  0x20   :  { %v100_v6 = vadd.f32 %v99_v3, %v98_v62  ;;  %v116_v8 = vsel %vm115_vm5, %v79_v1, %v114_v7  ;;  %vm216_vm9 = vcmask 80896  }
  0x21   :  { %v118_v10 = vsel %vm117_vm6, %v86_v2, %v116_v8 }
  0x22   :  { %v120_v11 = vsel %vm119_vm7, %v93_v4, %v118_v10 }
  0x23   :  { %v122_v12 = vsel %vm121_vm8, %v100_v6, %v120_v11 }
  0x24   :  { %v124_v13 = vadd.f32 %v122_v12, %v35_v9 }
  0x26   :  { %125 = vst.msk [vmem:[#allocation2] sm:$0xff] %vm33_vm0, %v124_v13 }
  0x2d   :  { %v129_v14 = vld [vmem:[#allocation2] sm:$0xff] }
  0x2e   :  { %249 = vmatmul.mubr.msk.f32.vlgmr.msra.gmra.mxu0 %vm33_vm0, %v129_v14 }
  0xee   :  { %v203_v15 = vpop.f32.mrf.mxu0 }
  0xef   :  { %v207_v17 = vmul.f32 0.125, %v203_v15 }
  0xf0   :  { %v250_v18 = vpop.f32.mrf.mxu0 }
  0xf1   :  { %v215_v19 = vadd.f32 %v234_v16, %v207_v17 }
  0xf3   :  { %217 = vst.msk [vmem:[#allocation6] sm:$0xff] %vm216_vm9, %v215_v19 }
  0xf4   :  { %288 = shalt.err (!%p285_p9)
}
  0xf5   :  { %227 = dma.vmem_to_hbm [thread:$0]  %s225_s28, 128, %s364_s3, [#allocation5]  }
  0xf6   :  { %299 = dma.done.wait [#allocation5], 128  }
  0xf7   :  { %300 = vsyncadd [#allocation5], 4294967168 }
  0xf8   :  { %231 = vsyncpa [#allocation4], 1 }
  0xf9   :  { %232 = vsyncpa [#allocation5], 1 }

</bundles_post_ra>
